<compile_context>
chip_gen: v5e
topology: v5e:2x2
jax: 0.10.0
libtpu: 0.0.40
codegen_flags: <defaults>
</compile_context>

<pallas_src>
import functools

import jax
import jax.numpy as jnp
from jax.experimental import pallas as pl
from jax.experimental.pallas import tpu as pltpu


LANES = 1024                      # lane-dense last dim (8 full vreg widths)
TM_MAX = 512                      # rows/tile -> 2 MiB per input tile (f32)
_VMEM_LIMIT = 32 * 1024 * 1024    # safe on v5e/v6e/v7x; ~12 MiB actually used


def _round_up(x, m):
    return ((x + m - 1) // m) * m


def _pack_lane_dense(x, rows_p, lanes):
    """Flatten to 1-D, zero-pad to rows_p*lanes, reshape to (rows_p, lanes)."""
    flat = x.reshape(-1)
    pad = rows_p * lanes - flat.shape[0]
    if pad:
        flat = jnp.pad(flat, (0, pad))
    return flat.reshape(rows_p, lanes)


# ----------------------------- reduction kernel -----------------------------
def _mse_reduce_kernel(pred_ref, target_ref, out_ref, acc_ref, *, scale):
    # grid = (num_splits ['parallel'], steps ['arbitrary' reduction axis])
    k = pl.program_id(1)

    @pl.when(k == 0)
    def _():
        acc_ref[...] = jnp.zeros_like(acc_ref)

    d = pred_ref[...].astype(jnp.float32) - target_ref[...].astype(jnp.float32)
    acc_ref[...] += d * d          # pure VPU work in the steady-state loop

    @pl.when(k == pl.num_programs(1) - 1)
    def _():
        # single cross-lane reduction + scale, once per split
        out_ref[0, 0] = jnp.sum(acc_ref[...]) * jnp.float32(scale)


# ----------------------------- elementwise kernel ('none') ------------------
def _mse_elementwise_kernel(pred_ref, target_ref, out_ref):
    d = pred_ref[...].astype(jnp.float32) - target_ref[...].astype(jnp.float32)
    out_ref[...] = (d * d).astype(out_ref.dtype)


# ----------------------------- wrapper ---------------------------------------
def mse_loss_pallas(pred, target, num_classes, reduction="mean"):
    """Pallas equivalent of MSE(num_classes, reduction).forward(pred, target)."""
    # TODO(synk): the channel slice is done in XLA (one extra pred copy); the
    # lane-dense repack needs a contiguous flatten anyway.
    pred = pred[..., :num_classes]
    assert pred.shape == target.shape, (
        "pred tensor must have the same size as the target tensor"
    )

    orig_shape = pred.shape
    out_dtype = jnp.result_type(pred.dtype, target.dtype)
    n = 1
    for s in orig_shape:
        n *= int(s)

    if reduction == "none":
        rows = max(-(-n // LANES), 1)
        rows_p = _round_up(rows, 8)
        tm = min(TM_MAX, rows_p)
        rows_p = _round_up(rows_p, tm)

        p2 = _pack_lane_dense(pred, rows_p, LANES)
        t2 = _pack_lane_dense(target, rows_p, LANES)

        out = pl.pallas_call(
            _mse_elementwise_kernel,
            out_shape=jax.ShapeDtypeStruct((rows_p, LANES), out_dtype),
            grid_spec=pltpu.PrefetchScalarGridSpec(
                num_scalar_prefetch=0,
                grid=(rows_p // tm,),
                in_specs=[
                    pl.BlockSpec((tm, LANES), lambda i: (i, 0)),
                    pl.BlockSpec((tm, LANES), lambda i: (i, 0)),
                ],
                out_specs=pl.BlockSpec((tm, LANES), lambda i: (i, 0)),
            ),
            compiler_params=pltpu.CompilerParams(
                dimension_semantics=("parallel",),
                vmem_limit_bytes=_VMEM_LIMIT,
            ),
        )(p2, t2)
        return out.reshape(-1)[:n].reshape(orig_shape)

    if reduction == "mean":
        scale = 1.0 / float(n)
    elif reduction == "sum":
        scale = 1.0
    else:
        raise ValueError(f"unsupported reduction: {reduction}")

    rows = max(-(-n // LANES), 1)
    rows_p = _round_up(rows, 8)
    tm = min(TM_MAX, rows_p)
    # 2-way split of the row range: on v7x the leading 'parallel' axis is
    # sharded across the two TensorCores; on v5e/v6e it just runs serially.
    num_splits = 2 if rows_p >= 2 * tm else 1
    rows_p = _round_up(rows_p, num_splits * tm)
    steps = rows_p // (num_splits * tm)

    p2 = _pack_lane_dense(pred, rows_p, LANES)
    t2 = _pack_lane_dense(target, rows_p, LANES)

    kernel = functools.partial(_mse_reduce_kernel, scale=scale)
    partials = pl.pallas_call(
        kernel,
        out_shape=jax.ShapeDtypeStruct((num_splits, 1), jnp.float32),
        grid_spec=pltpu.PrefetchScalarGridSpec(
            num_scalar_prefetch=0,
            grid=(num_splits, steps),
            in_specs=[
                pl.BlockSpec((tm, LANES), lambda c, k: (c * steps + k, 0)),
                pl.BlockSpec((tm, LANES), lambda c, k: (c * steps + k, 0)),
            ],
            out_specs=pl.BlockSpec(
                (1, 1), lambda c, k: (c, 0), memory_space=pltpu.SMEM
            ),
            scratch_shapes=[pltpu.VMEM((tm, LANES), jnp.float32)],
        ),
        compiler_params=pltpu.CompilerParams(
            dimension_semantics=("parallel", "arbitrary"),
            vmem_limit_bytes=_VMEM_LIMIT,
        ),
    )(p2, t2)
    return jnp.sum(partials).astype(out_dtype)


if __name__ == "__main__":
    key = jax.random.PRNGKey(0)
    k1, k2, k3, k4 = jax.random.split(key, 4)

    # 1) module-shaped small case: pred has extra channels beyond num_classes
    num_classes = 16
    pred = jax.random.normal(k1, (2, 8, 32), dtype=jnp.float32)
    target = jax.random.normal(k2, (2, 8, num_classes), dtype=jnp.float32)

    loss = jax.block_until_ready(
        mse_loss_pallas(pred, target, num_classes, reduction="mean"))
    ref = jnp.mean((pred[..., :num_classes] - target) ** 2)
    assert jnp.allclose(loss, ref, rtol=1e-5, atol=1e-6), (loss, ref)

    loss_sum = jax.block_until_ready(
        mse_loss_pallas(pred, target, num_classes, reduction="sum"))
    ref_sum = jnp.sum((pred[..., :num_classes] - target) ** 2)
    assert jnp.allclose(loss_sum, ref_sum, rtol=1e-5, atol=1e-4), (loss_sum, ref_sum)

    loss_none = jax.block_until_ready(
        mse_loss_pallas(pred, target, num_classes, reduction="none"))
    ref_none = (pred[..., :num_classes] - target) ** 2
    assert loss_none.shape == ref_none.shape
    assert jnp.allclose(loss_none, ref_none, rtol=1e-5, atol=1e-6)

    # 2) ragged shape (rows not a multiple of 8, odd num_classes) -> padding path
    pred_r = jax.random.normal(k3, (3, 7, 10), dtype=jnp.float32)
    target_r = jax.random.normal(k4, (3, 7, 5), dtype=jnp.float32)
    loss_r = jax.block_until_ready(mse_loss_pallas(pred_r, target_r, 5, "mean"))
    ref_r = jnp.mean((pred_r[..., :5] - target_r) ** 2)
    assert jnp.allclose(loss_r, ref_r, rtol=1e-5, atol=1e-6), (loss_r, ref_r)

    # 3) larger case exercising multi-step pipelining + the 2-way core split
    pred_l = jax.random.normal(k1, (4, 4096, 160), dtype=jnp.float32)
    target_l = jax.random.normal(k2, (4, 4096, 128), dtype=jnp.float32)
    loss_l = jax.block_until_ready(mse_loss_pallas(pred_l, target_l, 128, "mean"))
    ref_l = jnp.mean((pred_l[..., :128] - target_l) ** 2)
    assert jnp.allclose(loss_l, ref_l, rtol=1e-4, atol=1e-6), (loss_l, ref_l)

    print("KERNEL_OK")
</pallas_src>

<mosaic_0001>
module attributes {stable_mosaic.version = 11 : i64} {
  func.func @_mse_reduce_kernel(%arg0: i32, %arg1: i32, %arg2: memref<8x1024xf32, #tpu.memory_space<vmem>>, %arg3: memref<8x1024xf32, #tpu.memory_space<vmem>>, %arg4: memref<1x1xf32, #tpu.memory_space<smem>>, %arg5: memref<8x1024xf32, #tpu.memory_space<vmem>>) attributes {dimension_semantics = [#tpu.dimension_semantics<parallel>, #tpu.dimension_semantics<arbitrary>], iteration_bounds = array<i64: 1, 1>, scalar_prefetch = 0 : i64, scratch_operands = 1 : i64, tpu.core_type = #tpu.core_type<tc>, window_params = [{transform_indices = @transform_0, window_bounds = array<i64: 8, 1024>}, {transform_indices = @transform_1, window_bounds = array<i64: 8, 1024>}, {transform_indices = @transform_2, window_bounds = array<i64: 1, 1>}]} {
    %c0_i32 = arith.constant 0 : i32
    %0 = arith.cmpi eq, %arg1, %c0_i32 : i32
    %1 = arith.extui %0 : i1 to i32
    %c0_i32_0 = arith.constant 0 : i32
    %2 = arith.cmpi ne, %1, %c0_i32_0 : i32
    scf.if %2 {
      %cst = arith.constant 0.000000e+00 : f32
      %13 = vector.broadcast %cst : f32 to vector<8x1024xf32>
      %c0_10 = arith.constant 0 : index
      %c0_11 = arith.constant 0 : index
      %14 = vector.load %arg5[%c0_10, %c0_11] : memref<8x1024xf32, #tpu.memory_space<vmem>>, vector<8x1024xf32>
      tpu.vector_store %arg5[%c0_10, %c0_11], %13 {strides = array<i32>} : memref<8x1024xf32, #tpu.memory_space<vmem>>, vector<8x1024xf32>,
    } else {
    }
    %c0 = arith.constant 0 : index
    %c0_1 = arith.constant 0 : index
    %3 = vector.load %arg2[%c0, %c0_1] : memref<8x1024xf32, #tpu.memory_space<vmem>>, vector<8x1024xf32>
    %c0_2 = arith.constant 0 : index
    %c0_3 = arith.constant 0 : index
    %4 = vector.load %arg3[%c0_2, %c0_3] : memref<8x1024xf32, #tpu.memory_space<vmem>>, vector<8x1024xf32>
    %5 = arith.subf %3, %4 : vector<8x1024xf32>
    %c0_4 = arith.constant 0 : index
    %c0_5 = arith.constant 0 : index
    %6 = vector.load %arg5[%c0_4, %c0_5] : memref<8x1024xf32, #tpu.memory_space<vmem>>, vector<8x1024xf32>
    %7 = arith.mulf %5, %5 : vector<8x1024xf32>
    %8 = arith.addf %6, %7 : vector<8x1024xf32>
    %c0_6 = arith.constant 0 : index
    %c0_7 = arith.constant 0 : index
    %9 = vector.load %arg5[%c0_6, %c0_7] : memref<8x1024xf32, #tpu.memory_space<vmem>>, vector<8x1024xf32>
    tpu.vector_store %arg5[%c0_6, %c0_7], %8 {strides = array<i32>} : memref<8x1024xf32, #tpu.memory_space<vmem>>, vector<8x1024xf32>,
    %c0_i32_8 = arith.constant 0 : i32
    %10 = arith.cmpi eq, %arg1, %c0_i32_8 : i32
    %11 = arith.extui %10 : i1 to i32
    %c0_i32_9 = arith.constant 0 : i32
    %12 = arith.cmpi ne, %11, %c0_i32_9 : i32
    scf.if %12 {
      %c0_10 = arith.constant 0 : index
      %c0_11 = arith.constant 0 : index
      %13 = vector.load %arg5[%c0_10, %c0_11] : memref<8x1024xf32, #tpu.memory_space<vmem>>, vector<8x1024xf32>
      %14 = vector.shape_cast %13 : vector<8x1024xf32> to vector<1x8x1024xf32>
      %cst = arith.constant dense<0.000000e+00> : vector<1xf32>
      %15 = vector.multi_reduction <add>, %14, %cst [1, 2] : vector<1x8x1024xf32> to vector<1xf32>
      %16 = vector.shape_cast %15 : vector<1xf32> to vector<1x1x1xf32>
      %17 = vector.extract %16[0, 0, 0] : f32 from vector<1x1x1xf32>
      %cst_12 = arith.constant 3.906250e-03 : f32
      %18 = arith.mulf %17, %cst_12 : f32
      %c0_13 = arith.constant 0 : index
      %c0_14 = arith.constant 0 : index
      %19 = memref.load %arg4[%c0_13, %c0_14] : memref<1x1xf32, #tpu.memory_space<smem>>
      memref.store %18, %arg4[%c0_13, %c0_14] : memref<1x1xf32, #tpu.memory_space<smem>>
    } else {
    }
    return
  }
  func.func @transform_0(%arg0: i32, %arg1: i32) -> (i32, i32) {
    %c1_i32 = arith.constant 1 : i32
    %0 = arith.muli %arg0, %c1_i32 : i32
    %1 = arith.addi %0, %arg1 : i32
    %c0_i32 = arith.constant 0 : i32
    %c0_i32_0 = arith.constant 0 : i32
    return %1, %c0_i32 : i32, i32
  }
  func.func @transform_1(%arg0: i32, %arg1: i32) -> (i32, i32) {
    %c1_i32 = arith.constant 1 : i32
    %0 = arith.muli %arg0, %c1_i32 : i32
    %1 = arith.addi %0, %arg1 : i32
    %c0_i32 = arith.constant 0 : i32
    %c0_i32_0 = arith.constant 0 : i32
    return %1, %c0_i32 : i32, i32
  }
  func.func @transform_2(%arg0: i32, %arg1: i32) -> (i32, i32) {
    %c0_i32 = arith.constant 0 : i32
    %c0_i32_0 = arith.constant 0 : i32
    return %arg0, %c0_i32 : i32, i32
  }
}

</mosaic_0001>

<bundles_post_ra>
// kernel: tpu_custom_call.1
= control target key start
LH: loop header
LB: loop body
LE: loop exit
PB: predicated region body
PF: predicated region fallthrough
CT: control target
= control target key end

     0   :  { %7 = vsyncpa [#allocation4], 0  ;;  %s263_s0 = inlined_call_operand.hbm [shape: f32[8,1024], index: 0, kind: input, shape index: {}]   ;;  %s264_s1 = inlined_call_operand.hbm [shape: f32[8,1024], index: 1, kind: input, shape index: {}]   ;;  %s265_s2 = inlined_call_operand.hbm [shape: f32[1,1], index: 2, kind: output, shape index: {}]  }
   0x1   :  { %8 = vsyncpa [#allocation7], 0 }
   0x2   :  { %9 = vsyncpa [#allocation5], 0  ;;  %s19_s11 = sshll.u32 %s263_s0, 4  ;;  %s236_s12 = smov [#allocation3]   ;;  %s20_s11 = int_to_ptr.hbm [resolvable:$true] %s19_s11 }
   0x3   :  { %s21_s13 = sshll.u32 %s236_s12, 4  ;;  %s34_s16 = sshll.u32 %s264_s1, 4  ;;  %s22_s13 = int_to_ptr.vmem [resolvable:$true] %s21_s13  ;;  %s35_s16 = int_to_ptr.hbm [resolvable:$true] %s34_s16 }
   0x4   :  { %24 = dma.hbm_to_vmem [thread:$0]  %s20_s11, 1024, %s22_s13, [#allocation4]  }
   0x5   :  { %s237_s17 = smov [#allocation6]  }
   0x6   :  { %s36_s18 = sshll.u32 %s237_s17, 4  ;;  %s37_s18 = int_to_ptr.vmem [resolvable:$true] %s36_s18 }
   0x7   :  { %39 = dma.hbm_to_vmem [thread:$0]  %s35_s16, 1024, %s37_s18, [#allocation7]  }
   0x8   :  { %230 = dma.done.wait [#allocation4], 1024  }
   0x9   :  { %231 = vsyncadd [#allocation4], 4294966272 }
   0xa   :  { %232 = dma.done.wait [#allocation7], 1024  }
   0xb   :  { %233 = vsyncadd [#allocation7], 4294966272  ;;  %v62_v0 = vld [vmem:[#allocation3] sm:$0xff]  ;;  %v63_v1 = vld [vmem:[#allocation3 + $0x8] sm:$0xff]  ;;  %s153_s19 = sshll.u32 %s265_s2, 4  ;;  %s238_s22 = smov [#allocation8]   ;;  %s154_s19 = int_to_ptr.hbm [resolvable:$true] %s153_s19 }
   0xc   :  { %v64_v2 = vld [vmem:[#allocation3 + $0x10] sm:$0xff]  ;;  %v65_v3 = vld [vmem:[#allocation3 + $0x18] sm:$0xff]  ;;  %v66_v4 = vld [vmem:[#allocation3 + $0x20] sm:$0xff] }
   0xd   :  { %v70_v5 = vld [vmem:[#allocation6] sm:$0xff]  ;;  %v71_v6 = vld [vmem:[#allocation6 + $0x8] sm:$0xff]  ;;  %v72_v7 = vld [vmem:[#allocation6 + $0x10] sm:$0xff] }
   0xe   :  { %v73_v8 = vld [vmem:[#allocation6 + $0x18] sm:$0xff]  ;;  %v78_v9 = vsub.f32 %v62_v0, %v70_v5  ;;  %v74_v10 = vld [vmem:[#allocation6 + $0x20] sm:$0xff]  ;;  %v79_v11 = vsub.f32 %v63_v1, %v71_v6  ;;  %v80_v12 = vsub.f32 %v64_v2, %v72_v7  ;;  %v67_v14 = vld [vmem:[#allocation3 + $0x28] sm:$0xff] }
   0xf   :  { %v81_v13 = vsub.f32 %v65_v3, %v73_v8  ;;  %v75_v15 = vld [vmem:[#allocation6 + $0x28] sm:$0xff]  ;;  %v82_v17 = vsub.f32 %v66_v4, %v74_v10  ;;  %v68_v20 = vld [vmem:[#allocation3 + $0x30] sm:$0xff]  ;;  %v69_v25 = vld [vmem:[#allocation3 + $0x38] sm:$0xff] }
  0x10   :  { %v94_v16 = vmul.f32 %v78_v9, %v78_v9  ;;  %v95_v18 = vmul.f32 %v79_v11, %v79_v11  ;;  %v96_v19 = vmul.f32 %v80_v12, %v80_v12  ;;  %v76_v21 = vld [vmem:[#allocation6 + $0x30] sm:$0xff]  ;;  %v83_v22 = vsub.f32 %v67_v14, %v75_v15  ;;  %v77_v26 = vld [vmem:[#allocation6 + $0x38] sm:$0xff] }
  0x11   :  { %v97_v23 = vmul.f32 %v81_v13, %v81_v13  ;;  %v84_v27 = vsub.f32 %v68_v20, %v76_v21  ;;  %v98_v28 = vmul.f32 %v82_v17, %v82_v17  ;;  %v85_v30 = vsub.f32 %v69_v25, %v77_v26 }
  0x12   :  { %v129_v24 = vadd.f32 %v95_v18, %v94_v16  ;;  %v99_v31 = vmul.f32 %v83_v22, %v83_v22 }
  0x13   :  { %v100_v33 = vmul.f32 %v84_v27, %v84_v27  ;;  %v101_v35 = vmul.f32 %v85_v30, %v85_v30 }
  0x14   :  { %v130_v29 = vadd.f32 %v129_v24, %v96_v19 }
  0x16   :  { %v131_v32 = vadd.f32 %v130_v29, %v97_v23 }
  0x18   :  { %v132_v34 = vadd.f32 %v131_v32, %v98_v28 }
  0x1a   :  { %v133_v36 = vadd.f32 %v132_v34, %v99_v31 }
  0x1c   :  { %v134_v37 = vadd.f32 %v133_v36, %v100_v33 }
  0x1e   :  { %v135_v38 = vadd.f32 %v134_v37, %v101_v35 }
  0x20   :  { %136 = vadd.xlane.f32.xlu0 %v135_v38 }
  0x93   :  { %v137_v39 = vpop.xlane.xlu0 %136 }
  0x94   :  { %v138_v40 = vrot.slane %v137_v39, 4 }
  0x96   :  { %v139_v41 = vadd.f32 %v138_v40, %v137_v39 }
  0x98   :  { %v140_v42 = vrot.slane %v139_v41, 2 }
  0x9a   :  { %v141_v43 = vadd.f32 %v140_v42, %v139_v41 }
  0x9c   :  { %v142_v44 = vrot.slane %v141_v43, 1 }
  0x9e   :  { %v143_v45 = vadd.f32 %v142_v44, %v141_v43 }
  0xa0   :  { %165 = vpush %v143_v45 }
  0xd1   :  { %s166_s20 = spop %165 }
  0xd2   :  { %s145_s21 = smul.f32 0.00390625, %s166_s20 }
  0xd4   :  { %147 = sst [smem:[#allocation8]] %s145_s21 }
  0xd5   :  { %156 = dma.smem_to_hbm %s238_s22, 16, %s154_s19, [#allocation5]  }
  0xd6   :  { %234 = dma.done.wait [#allocation5], 16  }
  0xd7   :  { %235 = vsyncadd [#allocation5], 4294967280 }
  0xd8   :  { %161 = sfence }
  0xd9   :  { %162 = vsyncpa [#allocation4], 1 }
  0xda   :  { %163 = vsyncpa [#allocation7], 1 }
  0xdb   :  { %164 = vsyncpa [#allocation5], 1 }

</bundles_post_ra>
